<compile_context>
chip_gen: v7x
topology: tpu7x:2x2x1
jax: 0.10.0
libtpu: 0.0.40
codegen_flags: <defaults>
</compile_context>

<pallas_src>
import math
import jax
import jax.numpy as jnp
from jax.experimental import pallas as pl
from jax.experimental.pallas import tpu as pltpu

_MIB = 1024 * 1024


def _round_up(x, m):
    return ((x + m - 1) // m) * m


def _cdiv(a, b):
    return -(-a // b)


def _detect_chip():
    try:
        kind = jax.devices()[0].device_kind.lower()
    except Exception:
        return "unknown"
    if "v5 lite" in kind or "v5e" in kind or "v5litepod" in kind:
        return "v5e"
    if "v6" in kind:
        return "v6e"
    if "v7" in kind:
        return "v7x"
    return "unknown"


# Per-generation (tm_target, tk_target, vmem_limit_bytes).
# Ridge points: ~240 FLOP/B (v5e), ~650 (v6e), ~310 (v7x); tm ~= achieved AI.
_CHIP_CONFIG = {
    "v5e":     (256, 1024, 100 * _MIB),   # near ridge already; big tk halves acc-RMW k-steps
    "v6e":     (768, 1024, 100 * _MIB),   # needs large tm; 128 MiB physical VMEM
    "v7x":     (512,  512,  52 * _MIB),   # 64 MiB VMEM/TC -> explicit headroom
    "unknown": (512,  512,  64 * _MIB),
}


def _pick_tk(d_inner_p, target):
    """Largest multiple of 128 that divides d_inner_p (itself a multiple of 128)
    and is <= target.  Avoids padding d_inner beyond the 128 round-up."""
    target = max(128, min(target, d_inner_p))
    best = 128
    t = 128
    while t <= target:
        if d_inner_p % t == 0:
            best = t
        t += 128
    return best


def _vmem_estimate(tm, tk, d_model_p, in_bytes, out_bytes, use_scratch):
    """Rough double-buffered working-set size in bytes."""
    x_b = 2 * tm * d_model_p * in_bytes
    o_b = 2 * tm * d_model_p * out_bytes
    acc = tm * d_model_p * 4 if use_scratch else 0
    w1 = 2 * d_model_p * tk * in_bytes
    w2 = 2 * tk * d_model_p * in_bytes
    bias = 2 * (tk + d_model_p) * max(in_bytes, 4)
    return x_b + o_b + acc + w1 + w2 + bias


def _ff_kernel_f32_out(x_ref, w1_ref, b1_ref, w2_ref, b2_ref, o_ref):
    """f32 output: accumulate directly into the resident output block
    (saves tm*d_model*4 B of VMEM and a full-tile copy per row tile)."""
    k = pl.program_id(1)

    @pl.when(k == 0)
    def _():
        # Fold the second bias into the accumulator init.
        o_ref[...] = jnp.broadcast_to(
            b2_ref[...].astype(jnp.float32), o_ref.shape)

    # Linear1 chunk on the MXU: native-dtype operands, f32 accumulation.
    h = jnp.dot(x_ref[...], w1_ref[...], preferred_element_type=jnp.float32)
    h = jnp.maximum(h + b1_ref[...].astype(jnp.float32), 0.0)
    # (Dropout: identity in eval mode.)

    # Linear2 partial product, accumulated over d_inner chunks.
    o_ref[...] += jnp.dot(h.astype(w2_ref.dtype), w2_ref[...],
                          preferred_element_type=jnp.float32)


def _ff_kernel_scratch(x_ref, w1_ref, b1_ref, w2_ref, b2_ref, o_ref, acc_ref):
    """Low-precision output: f32 VMEM scratch accumulator, cast at last k."""
    k = pl.program_id(1)

    @pl.when(k == 0)
    def _():
        acc_ref[...] = jnp.broadcast_to(
            b2_ref[...].astype(jnp.float32), acc_ref.shape)

    h = jnp.dot(x_ref[...], w1_ref[...], preferred_element_type=jnp.float32)
    h = jnp.maximum(h + b1_ref[...].astype(jnp.float32), 0.0)
    # (Dropout: identity in eval mode.)
    acc_ref[...] += jnp.dot(h.astype(w2_ref.dtype), w2_ref[...],
                            preferred_element_type=jnp.float32)

    @pl.when(k == pl.num_programs(1) - 1)
    def _():
        o_ref[...] = acc_ref[...].astype(o_ref.dtype)


def position_wise_ff(x, w1, b1, w2, b2, *, tm=None, tk=None,
                     compute_dtype=None, vmem_limit_bytes=None):
    """y = Linear2(ReLU(Linear1(x)));  x: (batch, seq, d_model) -> same shape.

    compute_dtype: optional (e.g. jnp.bfloat16) fast path casting x/W1/W2 for
    the matmuls; accumulation stays f32 and output keeps x's original dtype.
    """
    batch, seq, d_model = x.shape
    d_inner = w1.shape[1]
    assert w1.shape == (d_model, d_inner)
    assert b1.shape == (d_inner,)
    assert w2.shape == (d_inner, d_model)
    assert b2.shape == (d_model,)

    out_dtype = x.dtype
    if compute_dtype is not None:
        x = x.astype(compute_dtype)
        w1 = w1.astype(compute_dtype)
        w2 = w2.astype(compute_dtype)

    chip = _detect_chip()
    tm_target, tk_target, vmem_default = _CHIP_CONFIG[chip]
    if tm is not None:
        tm_target = tm
    if tk is not None:
        tk_target = tk
    if vmem_limit_bytes is None:
        vmem_limit_bytes = vmem_default

    rows = batch * seq
    x2 = x.reshape(rows, d_model)

    in_bytes = jnp.dtype(x.dtype).itemsize
    out_bytes = jnp.dtype(out_dtype).itemsize
    use_scratch = jnp.dtype(out_dtype) != jnp.float32

    # Sublane pack for the operand dtype (avoid masked sub-tile layouts).
    pack = {4: 8, 2: 16, 1: 32}.get(in_bytes, 8)

    # Lane-dense feature dims (multiples of 128); tk divides d_inner_p exactly.
    d_model_p = _round_up(d_model, 128)
    d_inner_p = _round_up(d_inner, 128)
    tk_sel = _pick_tk(d_inner_p, tk_target)

    # Row tile: MXU-friendly but never larger than the sublane-padded problem.
    tm_sel = max(pack, min(_round_up(tm_target, pack), _round_up(rows, pack)))

    # v7x: two TensorCores split the parallel (row-tile) axis -> prefer an even
    # tile count so neither core idles.
    if chip == "v7x":
        n_tiles = _cdiv(rows, tm_sel)
        if n_tiles > 1 and n_tiles % 2 == 1:
            n_tiles += 1
            tm_sel = max(pack, _round_up(_cdiv(rows, n_tiles), pack))

    # Shrink tiles until the double-buffered working set fits the VMEM budget
    # (leave ~15% headroom for compiler scratch).
    budget = int(0.85 * vmem_limit_bytes)
    while (_vmem_estimate(tm_sel, tk_sel, d_model_p, in_bytes, out_bytes,
                          use_scratch) > budget and tm_sel > pack):
        tm_sel = max(pack, _round_up(tm_sel // 2, pack))
    while (_vmem_estimate(tm_sel, tk_sel, d_model_p, in_bytes, out_bytes,
                          use_scratch) > budget and tk_sel > 128):
        tk_sel = _pick_tk(d_inner_p, tk_sel // 2)

    rows_p = _round_up(rows, tm_sel)

    if (d_model_p, d_inner_p) != (d_model, d_inner):
        # Zero padding is exact: padded hidden cols are ReLU(0 + 0) = 0 and
        # padded W2 rows/cols contribute 0; padded outputs are sliced off.
        x2 = jnp.pad(x2, ((0, 0), (0, d_model_p - d_model)))
        w1 = jnp.pad(w1, ((0, d_model_p - d_model), (0, d_inner_p - d_inner)))
        b1 = jnp.pad(b1, (0, d_inner_p - d_inner))
        w2 = jnp.pad(w2, ((0, d_inner_p - d_inner), (0, d_model_p - d_model)))
        b2 = jnp.pad(b2, (0, d_model_p - d_model))
    if rows_p != rows:
        x2 = jnp.pad(x2, ((0, rows_p - rows), (0, 0)))

    b1_2d = b1.reshape(1, d_inner_p)
    b2_2d = b2.reshape(1, d_model_p)

    grid = (rows_p // tm_sel, d_inner_p // tk_sel)

    in_specs = [
        pl.BlockSpec((tm_sel, d_model_p), lambda i, k: (i, 0)),    # x rows
        pl.BlockSpec((d_model_p, tk_sel), lambda i, k: (0, k)),    # W1 chunk
        pl.BlockSpec((1, tk_sel), lambda i, k: (0, k)),            # b1 chunk
        pl.BlockSpec((tk_sel, d_model_p), lambda i, k: (k, 0)),    # W2 chunk
        pl.BlockSpec((1, d_model_p), lambda i, k: (0, 0)),         # b2
    ]
    out_spec = pl.BlockSpec((tm_sel, d_model_p), lambda i, k: (i, 0))

    kernel = _ff_kernel_scratch if use_scratch else _ff_kernel_f32_out
    scratch = ([pltpu.VMEM((tm_sel, d_model_p), jnp.float32)]
               if use_scratch else [])

    out = pl.pallas_call(
        kernel,
        out_shape=jax.ShapeDtypeStruct((rows_p, d_model_p), out_dtype),
        grid_spec=pltpu.PrefetchScalarGridSpec(
            num_scalar_prefetch=0,
            grid=grid,
            in_specs=in_specs,
            out_specs=out_spec,
            scratch_shapes=scratch,
        ),
        compiler_params=pltpu.CompilerParams(
            dimension_semantics=("parallel", "arbitrary"),
            vmem_limit_bytes=vmem_limit_bytes),
    )(x2, w1, b1_2d, w2, b2_2d)

    return out[:rows, :d_model].reshape(batch, seq, d_model)


def init_params(key, d_model, d_inner, dtype=jnp.float32):
    """Matches nn.Linear's default U(-1/sqrt(fan_in), 1/sqrt(fan_in)) init."""
    k1, k2, k3, k4 = jax.random.split(key, 4)
    bound1 = 1.0 / math.sqrt(d_model)
    bound2 = 1.0 / math.sqrt(d_inner)
    w1 = jax.random.uniform(k1, (d_model, d_inner), dtype, -bound1, bound1)
    b1 = jax.random.uniform(k2, (d_inner,), dtype, -bound1, bound1)
    w2 = jax.random.uniform(k3, (d_inner, d_model), dtype, -bound2, bound2)
    b2 = jax.random.uniform(k4, (d_model,), dtype, -bound2, bound2)
    return w1, b1, w2, b2


def _ref_ffn(x, w1, b1, w2, b2):
    return jnp.maximum(x @ w1 + b1, 0.0) @ w2 + b2


if __name__ == "__main__":
    key = jax.random.PRNGKey(0)

    # Test 1: lane-aligned shapes, f32 (direct accumulate-into-output path).
    d_model, d_inner, batch, seq = 128, 256, 2, 8
    kx, kp, key = jax.random.split(key, 3)
    x = jax.random.normal(kx, (batch, seq, d_model), jnp.float32)
    w1, b1, w2, b2 = init_params(kp, d_model, d_inner)
    y = jax.block_until_ready(position_wise_ff(x, w1, b1, w2, b2))
    ref = _ref_ffn(x, w1, b1, w2, b2)
    assert y.shape == (batch, seq, d_model)
    assert jnp.allclose(y, ref, atol=1e-4, rtol=1e-4), "mismatch (aligned f32)"

    # Test 2: ragged shapes (exercises row + feature padding paths).
    d_model, d_inner, batch, seq = 32, 48, 2, 5
    kx, kp, key = jax.random.split(key, 3)
    x = jax.random.normal(kx, (batch, seq, d_model), jnp.float32)
    w1, b1, w2, b2 = init_params(kp, d_model, d_inner)
    y = jax.block_until_ready(position_wise_ff(x, w1, b1, w2, b2))
    ref = _ref_ffn(x, w1, b1, w2, b2)
    assert y.shape == (batch, seq, d_model)
    assert jnp.allclose(y, ref, atol=1e-4, rtol=1e-4), "mismatch (ragged f32)"

    # Test 3: bf16 operands (f32 scratch-accumulator path, multi-k reduction).
    d_model, d_inner, batch, seq = 128, 512, 2, 16
    kx, kp, key = jax.random.split(key, 3)
    x = jax.random.normal(kx, (batch, seq, d_model), jnp.bfloat16)
    w1, b1, w2, b2 = init_params(kp, d_model, d_inner, dtype=jnp.bfloat16)
    y = jax.block_until_ready(position_wise_ff(x, w1, b1, w2, b2, tk=256))
    ref = _ref_ffn(x.astype(jnp.float32), w1.astype(jnp.float32),
                   b1.astype(jnp.float32), w2.astype(jnp.float32),
                   b2.astype(jnp.float32))
    assert y.dtype == jnp.bfloat16 and y.shape == (batch, seq, d_model)
    assert jnp.allclose(y.astype(jnp.float32), ref, atol=5e-2, rtol=5e-2), \
        "mismatch (bf16)"

    print("KERNEL_OK")
</pallas_src>

<mosaic_0001>
module attributes {stable_mosaic.version = 11 : i64} {
  func.func @_ff_kernel_f32_out(%arg0: i32, %arg1: i32, %arg2: memref<16x128xf32, #tpu.memory_space<vmem>>, %arg3: memref<128x256xf32, #tpu.memory_space<vmem>>, %arg4: memref<1x256xf32, #tpu.memory_space<vmem>>, %arg5: memref<256x128xf32, #tpu.memory_space<vmem>>, %arg6: memref<1x128xf32, #tpu.memory_space<vmem>>, %arg7: memref<16x128xf32, #tpu.memory_space<vmem>>) attributes {dimension_semantics = [#tpu.dimension_semantics<parallel>, #tpu.dimension_semantics<arbitrary>], iteration_bounds = array<i64: 1, 1>, scalar_prefetch = 0 : i64, scratch_operands = 0 : i64, tpu.core_type = #tpu.core_type<tc>, window_params = [{transform_indices = @transform_0, window_bounds = array<i64: 16, 128>}, {transform_indices = @transform_1, window_bounds = array<i64: 128, 256>}, {transform_indices = @transform_2, window_bounds = array<i64: 1, 256>}, {transform_indices = @transform_3, window_bounds = array<i64: 256, 128>}, {pipeline_mode = #tpu.pipeline_mode<synchronous>, transform_indices = @transform_4, window_bounds = array<i64: 1, 128>}, {transform_indices = @transform_5, window_bounds = array<i64: 16, 128>}]} {
    %c0_i32 = arith.constant 0 : i32
    %0 = arith.cmpi eq, %arg1, %c0_i32 : i32
    %1 = arith.extui %0 : i1 to i32
    %c0_i32_0 = arith.constant 0 : i32
    %2 = arith.cmpi ne, %1, %c0_i32_0 : i32
    scf.if %2 {
      %c0_14 = arith.constant 0 : index
      %c0_15 = arith.constant 0 : index
      %16 = vector.load %arg6[%c0_14, %c0_15] : memref<1x128xf32, #tpu.memory_space<vmem>>, vector<1x128xf32>
      %17 = vector.shape_cast %16 : vector<1x128xf32> to vector<1x128xf32>
      %18 = vector.broadcast %17 : vector<1x128xf32> to vector<16x128xf32>
      %c0_16 = arith.constant 0 : index
      %c0_17 = arith.constant 0 : index
      %19 = vector.load %arg7[%c0_16, %c0_17] : memref<16x128xf32, #tpu.memory_space<vmem>>, vector<16x128xf32>
      tpu.vector_store %arg7[%c0_16, %c0_17], %18 {strides = array<i32>} : memref<16x128xf32, #tpu.memory_space<vmem>>, vector<16x128xf32>,
    } else {
    }
    %c0 = arith.constant 0 : index
    %c0_1 = arith.constant 0 : index
    %3 = vector.load %arg2[%c0, %c0_1] : memref<16x128xf32, #tpu.memory_space<vmem>>, vector<16x128xf32>
    %c0_2 = arith.constant 0 : index
    %c0_3 = arith.constant 0 : index
    %4 = vector.load %arg3[%c0_2, %c0_3] : memref<128x256xf32, #tpu.memory_space<vmem>>, vector<128x256xf32>
    %cst = arith.constant dense<0.000000e+00> : vector<16x256xf32>
    %5 = tpu.matmul %3, %4, %cst {dimension_numbers = #tpu.dot_dimension_numbers<[1], [0], [0], [1], [0, 0, 1, 1], [], []>} : vector<16x128xf32>, vector<128x256xf32>, vector<16x256xf32> -> vector<16x256xf32>
    %c0_4 = arith.constant 0 : index
    %c0_5 = arith.constant 0 : index
    %6 = vector.load %arg4[%c0_4, %c0_5] : memref<1x256xf32, #tpu.memory_space<vmem>>, vector<1x256xf32>
    %7 = vector.broadcast %6 : vector<1x256xf32> to vector<16x256xf32>
    %8 = arith.addf %5, %7 : vector<16x256xf32>
    %cst_6 = arith.constant 0.000000e+00 : f32
    %9 = vector.broadcast %cst_6 : f32 to vector<16x256xf32>
    %10 = arith.maximumf %8, %9 : vector<16x256xf32>
    %c0_7 = arith.constant 0 : index
    %c0_8 = arith.constant 0 : index
    %11 = vector.load %arg7[%c0_7, %c0_8] : memref<16x128xf32, #tpu.memory_space<vmem>>, vector<16x128xf32>
    %c0_9 = arith.constant 0 : index
    %c0_10 = arith.constant 0 : index
    %12 = vector.load %arg5[%c0_9, %c0_10] : memref<256x128xf32, #tpu.memory_space<vmem>>, vector<256x128xf32>
    %cst_11 = arith.constant dense<0.000000e+00> : vector<16x128xf32>
    %13 = tpu.matmul %10, %12, %cst_11 {dimension_numbers = #tpu.dot_dimension_numbers<[1], [0], [0], [1], [0, 0, 1, 1], [], []>} : vector<16x256xf32>, vector<256x128xf32>, vector<16x128xf32> -> vector<16x128xf32>
    %14 = arith.addf %11, %13 : vector<16x128xf32>
    %c0_12 = arith.constant 0 : index
    %c0_13 = arith.constant 0 : index
    %15 = vector.load %arg7[%c0_12, %c0_13] : memref<16x128xf32, #tpu.memory_space<vmem>>, vector<16x128xf32>
    tpu.vector_store %arg7[%c0_12, %c0_13], %14 {strides = array<i32>} : memref<16x128xf32, #tpu.memory_space<vmem>>, vector<16x128xf32>,
    return
  }
  func.func @transform_0(%arg0: i32, %arg1: i32) -> (i32, i32) {
    %c0_i32 = arith.constant 0 : i32
    %c0_i32_0 = arith.constant 0 : i32
    return %arg0, %c0_i32 : i32, i32
  }
  func.func @transform_1(%arg0: i32, %arg1: i32) -> (i32, i32) {
    %c0_i32 = arith.constant 0 : i32
    %c0_i32_0 = arith.constant 0 : i32
    return %c0_i32, %arg1 : i32, i32
  }
  func.func @transform_2(%arg0: i32, %arg1: i32) -> (i32, i32) {
    %c0_i32 = arith.constant 0 : i32
    %c0_i32_0 = arith.constant 0 : i32
    return %c0_i32, %arg1 : i32, i32
  }
  func.func @transform_3(%arg0: i32, %arg1: i32) -> (i32, i32) {
    %c0_i32 = arith.constant 0 : i32
    %c0_i32_0 = arith.constant 0 : i32
    return %arg1, %c0_i32 : i32, i32
  }
  func.func @transform_4(%arg0: i32, %arg1: i32) -> (i32, i32) {
    %c0_i32 = arith.constant 0 : i32
    %c0_i32_0 = arith.constant 0 : i32
    %c0_i32_1 = arith.constant 0 : i32
    return %c0_i32, %c0_i32_0 : i32, i32
  }
  func.func @transform_5(%arg0: i32, %arg1: i32) -> (i32, i32) {
    %c0_i32 = arith.constant 0 : i32
    %c0_i32_0 = arith.constant 0 : i32
    return %arg0, %c0_i32 : i32, i32
  }
}

</mosaic_0001>

<bundles_post_ra>
// kernel: tpu_custom_call.1
= control target key start
LH: loop header
LB: loop body
LE: loop exit
PB: predicated region body
PF: predicated region fallthrough
CT: control target
= control target key end

     0   :  { %10 = vsyncpa [#allocation3], 0  ;;  %s735_s0 = inlined_call_operand.hbm [shape: f32[16,128], index: 0, kind: input, shape index: {}]   ;;  %s736_s1 = inlined_call_operand.hbm [shape: f32[128,256], index: 1, kind: input, shape index: {}]   ;;  %s737_s2 = inlined_call_operand.hbm [shape: f32[1,256], index: 2, kind: input, shape index: {}]   ;;  %s738_s3 = inlined_call_operand.hbm [shape: f32[256,128], index: 3, kind: input, shape index: {}]   ;;  %s739_s4 = inlined_call_operand.hbm [shape: f32[1,128], index: 4, kind: input, shape index: {}]   ;;  %s740_s5 = inlined_call_operand.hbm [shape: f32[16,128], index: 5, kind: output, shape index: {}]  }
   0x1   :  { %11 = vsyncpa [#allocation6], 0 }
   0x2   :  { %12 = vsyncpa [#allocation9], 0 }
   0x3   :  { %13 = vsyncpa [#allocation4], 0  ;;  %s611_s18 = smov [#allocation5]   ;;  %s471_s22 = scalar_lea.hbm %s736_s1, 4096 }
   0x4   :  { %s31_s19 = sshll.u32 %s611_s18, 4  ;;  %p472_p0 = scmp.ne.s32.totalorder %s736_s1, %s471_s22  ;;  %s32_s19 = int_to_ptr.vmem [resolvable:$true] %s31_s19 }
   0x5   :  { %p475_p1 = scmp.lt.u32.totalorder %s471_s22, %s736_s1 }
   0x7   :  { %p477_p2 = pnand %p475_p1, %p472_p0 }
   0x9   :  { %480 = shalt.err (!%p477_p2)
}
   0xa   :  { %s481_s27 = scalar_lea.vmem %s32_s19, 4096  ;;  %p486_p4 = scmp.lt.s32.totalorder %s32_s19, %s32_s19 }
   0xb   :  { %p482_p3 = scmp.ne.s32.totalorder %s32_s19, %s481_s27  ;;  %p487_p5 = scmp.lt.s32.totalorder %s481_s27, %s481_s27 }
   0xd   :  { %p488_p6 = por %p487_p5, %p486_p4 }
   0xf   :  { %p489_p7 = pnand %p488_p6, %p482_p3 }
  0x11   :  { %492 = shalt.err (!%p489_p7)
}
  0x12   :  { %s612_s28 = smov 256   ;;  %s613_s29 = smov 16  }
  0x13   :  { %37 = dma.hbm_to_vmem [thread:$0]  %s736_s1, 4096, %s32_s19, [#allocation6], %s612_s28, %s612_s28, %s613_s29  }
  0x14   :  { %s614_s7 = smov [#allocation8]   ;;  %s615_s9 = smov [#allocation2]  }
  0x15   :  { %s53_s8 = sshll.u32 %s614_s7, 4  ;;  %s19_s10 = sshll.u32 %s615_s9, 4  ;;  %s54_s8 = int_to_ptr.vmem [resolvable:$true] %s53_s8  ;;  %s20_s10 = int_to_ptr.vmem [resolvable:$true] %s19_s10 }
  0x16   :  { %s493_s13 = scalar_lea.hbm %s738_s3, 4096 }
  0x17   :  { %p494_p8 = scmp.ne.s32.totalorder %s738_s3, %s493_s13  ;;  %p497_p9 = scmp.lt.u32.totalorder %s493_s13, %s738_s3 }
  0x19   :  { %p499_p10 = pnand %p497_p9, %p494_p8 }
  0x1b   :  { %502 = shalt.err (!%p499_p10)
}
  0x1c   :  { %s503_s1 = scalar_lea.vmem %s54_s8, 4096  ;;  %p508_p12 = scmp.lt.s32.totalorder %s54_s8, %s54_s8 }
  0x1d   :  { %p504_p11 = scmp.ne.s32.totalorder %s54_s8, %s503_s1  ;;  %p509_p13 = scmp.lt.s32.totalorder %s503_s1, %s503_s1 }
  0x1f   :  { %p510_p0 = por %p509_p13, %p508_p12 }
  0x21   :  { %p511_p1 = pnand %p510_p0, %p504_p11 }
  0x23   :  { %514 = shalt.err (!%p511_p1)
}
  0x24   :  { %s616_s18 = smov 128   ;;  %s617_s19 = smov 8  }
  0x25   :  { %59 = dma.hbm_to_vmem [thread:$0]  %s738_s3, 4096, %s54_s8, [#allocation9], %s616_s18, %s616_s18, %s617_s19  }
  0x26   :  { %s515_s24 = scalar_lea.hbm %s735_s0, 256 }
  0x27   :  { %p516_p2 = scmp.ne.s32.totalorder %s735_s0, %s515_s24  ;;  %p519_p3 = scmp.lt.u32.totalorder %s515_s24, %s735_s0 }
  0x29   :  { %p521_p4 = pnand %p519_p3, %p516_p2 }
  0x2b   :  { %524 = shalt.err (!%p521_p4)
}
  0x2c   :  { %s525_s29 = scalar_lea.vmem %s20_s10, 256  ;;  %p530_p6 = scmp.lt.s32.totalorder %s20_s10, %s20_s10 }
  0x2d   :  { %p526_p5 = scmp.ne.s32.totalorder %s20_s10, %s525_s29  ;;  %p531_p7 = scmp.lt.s32.totalorder %s525_s29, %s525_s29 }
  0x2f   :  { %p532_p8 = por %p531_p7, %p530_p6 }
  0x31   :  { %p533_p9 = pnand %p532_p8, %p526_p5 }
  0x33   :  { %536 = shalt.err (!%p533_p9)
}
  0x34   :  { %25 = dma.hbm_to_vmem [thread:$0]  %s735_s0, 256, %s20_s10, [#allocation3], %s616_s18, %s616_s18, %s617_s19  }
  0x35   :  { %s618_s6 = smov [#allocation7]   ;;  %s619_s8 = smov [#allocation10]  }
  0x36   :  { %s44_s7 = sshll.u32 %s618_s6, 4  ;;  %s66_s9 = sshll.u32 %s619_s8, 4  ;;  %s45_s7 = int_to_ptr.vmem [resolvable:$true] %s44_s7  ;;  %s67_s9 = int_to_ptr.vmem [resolvable:$true] %s66_s9 }
  0x37   :  { %s537_s13 = scalar_lea.hbm %s737_s2, 32 }
  0x38   :  { %p538_p10 = scmp.ne.s32.totalorder %s737_s2, %s537_s13  ;;  %p541_p11 = scmp.lt.u32.totalorder %s537_s13, %s737_s2 }
  0x3a   :  { %p543_p12 = pnand %p541_p11, %p538_p10 }
  0x3c   :  { %546 = shalt.err (!%p543_p12)
}
  0x3d   :  { %s547_s0 = scalar_lea.vmem %s45_s7, 32  ;;  %p552_p0 = scmp.lt.s32.totalorder %s45_s7, %s45_s7 }
  0x3e   :  { %p548_p13 = scmp.ne.s32.totalorder %s45_s7, %s547_s0  ;;  %p553_p1 = scmp.lt.s32.totalorder %s547_s0, %s547_s0 }
  0x40   :  { %p554_p2 = por %p553_p1, %p552_p0 }
  0x42   :  { %p555_p3 = pnand %p554_p2, %p548_p13 }
  0x44   :  { %558 = shalt.err (!%p555_p3)
}
  0x45   :  { %47 = dma.hbm_to_vmem [thread:$0]  %s737_s2, 32, %s45_s7, [#allocation6]  }
  0x46   :  { %s559_s22 = scalar_lea.hbm %s739_s4, 16 }
  0x47   :  { %p560_p4 = scmp.ne.s32.totalorder %s739_s4, %s559_s22  ;;  %p563_p5 = scmp.lt.u32.totalorder %s559_s22, %s739_s4 }
  0x49   :  { %p565_p6 = pnand %p563_p5, %p560_p4 }
  0x4b   :  { %568 = shalt.err (!%p565_p6)
}
  0x4c   :  { %s569_s27 = scalar_lea.vmem %s67_s9, 16  ;;  %s573_s28 = scalar_lea.vmem %s67_s9, 32 }
  0x4d   :  { %p570_p7 = scmp.ne.s32.totalorder %s67_s9, %s569_s27  ;;  %p574_p8 = scmp.lt.s32.totalorder %s67_s9, %s67_s9 }
  0x4e   :  { %p575_p9 = scmp.lt.s32.totalorder %s573_s28, %s569_s27 }
  0x50   :  { %p576_p10 = por %p575_p9, %p574_p8 }
  0x52   :  { %p577_p11 = pnand %p576_p10, %p570_p7 }
  0x54   :  { %580 = shalt.err (!%p577_p11)
}
  0x55   :  { %69 = dma.hbm_to_vmem [thread:$0]  %s739_s4, 16, %s67_s9, [#allocation9]  }
  0x56   :  { %603 = dma.done.wait [#allocation3], 256  }
  0x57   :  { %604 = vsyncadd [#allocation3], 4294967040 }
  0x58   :  { %605 = dma.done.wait [#allocation6], 4128  }
  0x59   :  { %606 = vsyncadd [#allocation6], 4294963168 }
  0x5a   :  { %607 = dma.done.wait [#allocation9], 4112  }
  0x5b   :  { %608 = vsyncadd [#allocation9], 4294963184  ;;  %v620_v0 = vmov 0.0   ;;  %v101_v1 = vld [vmem:[#allocation5 + $0x8] sm:$0xff]  ;;  %v103_v2 = vld [vmem:[#allocation5 + $0x18] sm:$0xff]  ;;  %s621_s4 = smov [#allocation11]  }
  0x5c   :  { %208 = vmatprep.mubr.f32.mxu0 %v620_v0  ;;  %v100_v3 = vld [vmem:[#allocation5] sm:$0xff]  ;;  %v396_v4 = vpack.c.bf16 %v103_v2, %v101_v1  ;;  %v102_v5 = vld [vmem:[#allocation5 + $0x10] sm:$0xff]  ;;  %v105_v6 = vld [vmem:[#allocation5 + $0x28] sm:$0xff]  ;;  %s343_s3 = sshll.u32 %s621_s4, 4  ;;  %s344_s3 = int_to_ptr.vmem [resolvable:$true] %s343_s3 }
  0x5d   :  { %v107_v7 = vld [vmem:[#allocation5 + $0x38] sm:$0xff]  ;;  %v398_v8 = vpack.c.bf16 %v102_v5, %v100_v3  ;;  %v104_v10 = vld [vmem:[#allocation5 + $0x20] sm:$0xff]  ;;  %v106_v11 = vld [vmem:[#allocation5 + $0x30] sm:$0xff]  ;;  %s581_s30 = scalar_lea.vmem %s344_s3, 256  ;;  %p586_p13 = scmp.lt.s32.totalorder %s344_s3, %s344_s3 }
  0x5e   :  { %v400_v9 = vpack.c.bf16 %v107_v7, %v105_v6  ;;  %v109_v12 = vld [vmem:[#allocation5 + $0x48] sm:$0xff]  ;;  %397 = vmatprep.subr.bf16.mxu0 %v396_v4  ;;  %v111_v13 = vld [vmem:[#allocation5 + $0x58] sm:$0xff]  ;;  %v402_v14 = vpack.c.bf16 %v106_v11, %v104_v10  ;;  %v108_v16 = vld [vmem:[#allocation5 + $0x40] sm:$0xff]  ;;  %p582_p12 = scmp.ne.s32.totalorder %s344_s3, %s581_s30  ;;  %p587_p0 = scmp.lt.s32.totalorder %s581_s30, %s581_s30 }
  0x5f   :  { %399 = vmatpush1.bf16.msra.mxu0 %v398_v8  ;;  %v404_v15 = vpack.c.bf16 %v111_v13, %v109_v12  ;;  %v110_v17 = vld [vmem:[#allocation5 + $0x50] sm:$0xff]  ;;  %v113_v18 = vld [vmem:[#allocation5 + $0x68] sm:$0xff]  ;;  %v115_v19 = vld [vmem:[#allocation5 + $0x78] sm:$0xff] }
  0x60   :  { %401 = vmatprep.subr.bf16.mxu0 %v400_v9  ;;  %v406_v20 = vpack.c.bf16 %v110_v17, %v108_v16  ;;  %v408_v21 = vpack.c.bf16 %v115_v19, %v113_v18  ;;  %v112_v22 = vld [vmem:[#allocation5 + $0x60] sm:$0xff]  ;;  %v114_v23 = vld [vmem:[#allocation5 + $0x70] sm:$0xff]  ;;  %v117_v24 = vld [vmem:[#allocation5 + $0x88] sm:$0xff]  ;;  %p588_p1 = por %p587_p0, %p586_p13 }
  0x61   :  { %v119_v25 = vld [vmem:[#allocation5 + $0x98] sm:$0xff]  ;;  %v116_v26 = vld [vmem:[#allocation5 + $0x80] sm:$0xff]  ;;  %v118_v27 = vld [vmem:[#allocation5 + $0x90] sm:$0xff]  ;;  %v410_v30 = vpack.c.bf16 %v114_v23, %v112_v22 }
  0x62   :  { %v243_v28 = vld [vmem:[#allocation8 + $0x80] sm:$0xff]  ;;  %v244_v29 = vld [vmem:[#allocation8 + $0x88] sm:$0xff]  ;;  %v245_v35 = vld [vmem:[#allocation8 + $0x90] sm:$0xff]  ;;  %v412_v36 = vpack.c.bf16 %v119_v25, %v117_v24  ;;  %v414_v46 = vpack.c.bf16 %v118_v27, %v116_v26  ;;  %p589_p2 = pnand %p588_p1, %p582_p12 }
  0x63   :  { %403 = vmatpush1.bf16.msra.mxu0 %v402_v14  ;;  %v121_v31 = vld [vmem:[#allocation5 + $0xa8] sm:$0xff]  ;;  %v428_v32 = vpack.c.bf16 %v244_v29, %v243_v28  ;;  %v246_v38 = vld [vmem:[#allocation8 + $0x98] sm:$0xff]  ;;  %v229_v39 = vld [vmem:[#allocation8 + $0x10] sm:$0xff] }
  0x64   :  { %405 = vmatprep.subr.bf16.mxu0 %v404_v15  ;;  %v227_v33 = vld [vmem:[#allocation8] sm:$0xff]  ;;  %v228_v34 = vld [vmem:[#allocation8 + $0x8] sm:$0xff]  ;;  %v230_v40 = vld [vmem:[#allocation8 + $0x18] sm:$0xff]  ;;  %v432_v42 = vpack.c.bf16 %v246_v38, %v245_v35 }
  0x65   :  { %v430_v37 = vpack.c.bf16 %v228_v34, %v227_v33  ;;  %v123_v41 = vld [vmem:[#allocation5 + $0xb8] sm:$0xff]  ;;  %429 = vmatprep.subr.bf16.mxu1 %v428_v32  ;;  %v247_v43 = vld [vmem:[#allocation8 + $0xa0] sm:$0xff]  ;;  %v248_v44 = vld [vmem:[#allocation8 + $0xa8] sm:$0xff]  ;;  %v434_v45 = vpack.c.bf16 %v230_v40, %v229_v39 }
  0x66   :  { %v120_v47 = vld [vmem:[#allocation5 + $0xa0] sm:$0xff]  ;;  %v436_v48 = vpack.c.bf16 %v248_v44, %v247_v43  ;;  %v232_v50 = vld [vmem:[#allocation8 + $0x28] sm:$0xff]  ;;  %v416_v51 = vpack.c.bf16 %v123_v41, %v121_v31  ;;  %v249_v53 = vld [vmem:[#allocation8 + $0xb0] sm:$0xff] }
  0x67   :  { %407 = vmatpush1.bf16.msra.mxu0 %v406_v20  ;;  %431 = vmatpush3.bf16.msra.mxu1 %v430_v37  ;;  %v231_v49 = vld [vmem:[#allocation8 + $0x20] sm:$0xff]  ;;  %v122_v52 = vld [vmem:[#allocation5 + $0xb0] sm:$0xff]  ;;  %v250_v54 = vld [vmem:[#allocation8 + $0xb8] sm:$0xff] }
  0x68   :  { %409 = vmatprep.subr.bf16.mxu0 %v408_v21  ;;  %433 = vmatprep.subr.bf16.mxu1 %v432_v42  ;;  %v125_v55 = vld [vmem:[#allocation5 + $0xc8] sm:$0xff]  ;;  %v127_v56 = vld [vmem:[#allocation5 + $0xd8] sm:$0xff]  ;;  %v438_v57 = vpack.c.bf16 %v232_v50, %v231_v49  ;;  %v418_v58 = vpack.c.bf16 %v122_v52, %v120_v47  ;;  %v124_v59 = vld [vmem:[#allocation5 + $0xc0] sm:$0xff]  ;;  %v440_v60 = vpack.c.bf16 %v250_v54, %v249_v53 }
  0x69   :  { %v233_v61 = vld [vmem:[#allocation8 + $0x30] sm:$0xff]  ;;  %v234_v62 = vld [vmem:[#allocation8 + $0x38] sm:$0xff]  ;;  %v420_v63 = vpack.c.bf16 %v127_v56, %v125_v55  ;;  %v251_v2 = vld [vmem:[#allocation8 + $0xc0] sm:$0xff] }
  0x6a   :  { %v126_v1 = vld [vmem:[#allocation5 + $0xd0] sm:$0xff]  ;;  %v129_v4 = vld [vmem:[#allocation5 + $0xe8] sm:$0xff]  ;;  %v131_v5 = vld [vmem:[#allocation5 + $0xf8] sm:$0xff]  ;;  %v442_v6 = vpack.c.bf16 %v234_v62, %v233_v61 }
  0x6b   :  { %411 = vmatpush1.bf16.msra.mxu0 %v410_v30  ;;  %435 = vmatpush3.bf16.msra.mxu1 %v434_v45  ;;  %v252_v3 = vld [vmem:[#allocation8 + $0xc8] sm:$0xff]  ;;  %v422_v7 = vpack.c.bf16 %v126_v1, %v124_v59  ;;  %v128_v8 = vld [vmem:[#allocation5 + $0xe0] sm:$0xff]  ;;  %v424_v12 = vpack.c.bf16 %v131_v5, %v129_v4  ;;  %v253_v14 = vld [vmem:[#allocation8 + $0xd0] sm:$0xff] }
  0x6c   :  { %413 = vmatprep.subr.bf16.mxu0 %v412_v36  ;;  %437 = vmatprep.subr.bf16.mxu1 %v436_v48  ;;  %v444_v9 = vpack.c.bf16 %v252_v3, %v251_v2  ;;  %v235_v10 = vld [vmem:[#allocation8 + $0x40] sm:$0xff]  ;;  %v236_v11 = vld [vmem:[#allocation8 + $0x48] sm:$0xff]  ;;  %v254_v15 = vld [vmem:[#allocation8 + $0xd8] sm:$0xff]  ;;  %v134_v36 = vlaneseq }
  0x6d   :  { %v130_v13 = vld [vmem:[#allocation5 + $0xf0] sm:$0xff]  ;;  %v446_v16 = vpack.c.bf16 %v236_v11, %v235_v10  ;;  %v448_v18 = vpack.c.bf16 %v254_v15, %v253_v14  ;;  %v238_v20 = vld [vmem:[#allocation8 + $0x58] sm:$0xff]  ;;  %v255_v21 = vld [vmem:[#allocation8 + $0xe0] sm:$0xff] }
  0x6e   :  { %v426_v17 = vpack.c.bf16 %v130_v13, %v128_v8  ;;  %v237_v19 = vld [vmem:[#allocation8 + $0x50] sm:$0xff]  ;;  %v256_v22 = vld [vmem:[#allocation8 + $0xe8] sm:$0xff]  ;;  %v239_v27 = vld [vmem:[#allocation8 + $0x60] sm:$0xff]  ;;  %v135_v37 = vshrl.u32 %v134_v36, 7 }
  0x6f   :  { %415 = vmatpush1.bf16.msra.mxu0 %v414_v46  ;;  %439 = vmatpush3.bf16.msra.mxu1 %v438_v57  ;;  %v450_v23 = vpack.c.bf16 %v238_v20, %v237_v19  ;;  %v98_v24 = vld [vmem:[#allocation2] sm:$0xff]  ;;  %v452_v25 = vpack.c.bf16 %v256_v22, %v255_v21  ;;  %v99_v26 = vld [vmem:[#allocation2 + $0x8] sm:$0xff]  ;;  %v132_v39 = vld [vmem:[#allocation7] sm:$0x3] }
  0x70   :  { %417 = vmatprep.subr.bf16.mxu0 %v416_v51  ;;  %441 = vmatprep.subr.bf16.mxu1 %v440_v60  ;;  %v240_v28 = vld [vmem:[#allocation8 + $0x68] sm:$0xff]  ;;  %v257_v30 = vld [vmem:[#allocation8 + $0xf0] sm:$0xff]  ;;  %v258_v31 = vld [vmem:[#allocation8 + $0xf8] sm:$0xff]  ;;  %v136_v38 = vsub.s32 0, %v135_v37 }
  0x71   :  { %v454_v29 = vpack.c.bf16 %v240_v28, %v239_v27  ;;  %v456_v32 = vpack.c.bf16 %v258_v31, %v257_v30  ;;  %v241_v33 = vld [vmem:[#allocation8 + $0x70] sm:$0xff]  ;;  %v242_v34 = vld [vmem:[#allocation8 + $0x78] sm:$0xff]  ;;  %v357_v55 = vld [vmem:[#allocation10] ss:$0 sm:$0xff] }
  0x72   :  { %v458_v35 = vpack.c.bf16 %v242_v34, %v241_v33  ;;  %v137_v40 = vrot.slane %v132_v39, %v136_v38 }
  0x73   :  { %419 = vmatpush1.bf16.msra.mxu0 %v418_v58  ;;  %443 = vmatpush3.bf16.msra.mxu1 %v442_v6 }
  0x74   :  { %421 = vmatprep.subr.bf16.mxu0 %v420_v63  ;;  %445 = vmatprep.subr.bf16.mxu1 %v444_v9 }
  0x77   :  { %423 = vmatpush1.bf16.msra.mxu0 %v422_v7  ;;  %447 = vmatpush3.bf16.msra.mxu1 %v446_v16 }
  0x78   :  { %425 = vmatprep.subr.bf16.mxu0 %v424_v12  ;;  %449 = vmatprep.subr.bf16.mxu1 %v448_v18 }
  0x7b   :  { %427 = vmatpush1.bf16.msra.mxu0 %v426_v17  ;;  %451 = vmatpush3.bf16.msra.mxu1 %v450_v23 }
  0x7c   :  { %453 = vmatprep.subr.bf16.mxu1 %v452_v25 }
  0x7e   :  { %209 = vmatmul.mubr.f32.vlgmr.msra.gmra.mrb[0].mxu0 %v98_v24 }
  0x7f   :  { %214 = vmatprep.mubr.f32.mxu0 %v620_v0  ;;  %455 = vmatpush3.bf16.msra.mxu1 %v454_v29  ;;  %v140_v0 = vsub.s32 1, %v135_v37 }
  0x80   :  { %457 = vmatprep.subr.bf16.mxu1 %v456_v32 }
  0x81   :  { %v141_v41 = vrot.slane %v132_v39, %v140_v0 }
  0x82   :  { %215 = vmatmul.mubr.f32.gmra.mrb[2].mxu0 %v99_v26 }
  0x83   :  { %459 = vmatpush3.bf16.msra.mxu1 %v458_v35 }
 0x151   :  { %v210_v42 = vpop.f32.mrb[0].mxu0 }
 0x152   :  { %v211_v43 = vadd.f32 %v210_v42, %v137_v40  ;;  %v212_v44 = vpop.f32.mrb[1].mxu0 }
 0x153   :  { %v213_v45 = vadd.f32 %v212_v44, %v141_v41 }
 0x154   :  { %v221_v48 = vmax.f32 %v211_v43, 0.0 }
 0x155   :  { %v216_v46 = vpop.f32.mrb[2].mxu0  ;;  %v222_v47 = vmax.f32 %v213_v45, 0.0 }
 0x156   :  { %v217_v49 = vadd.f32 %v216_v46, %v137_v40  ;;  %v218_v50 = vpop.f32.mrb[3].mxu0 }
 0x157   :  { %v219_v51 = vadd.f32 %v218_v50, %v141_v41  ;;  %323 = vmatprep.mubr.f32.mxu1 %v222_v47 }
 0x158   :  { %324 = vmatmul.mubr.f32.vlgmr.msra.gmra.mrb[0].mxu1 %v221_v48  ;;  %v223_v53 = vmax.f32 %v217_v49, 0.0 }
 0x159   :  { %v224_v52 = vmax.f32 %v219_v51, 0.0 }
 0x15b   :  { %328 = vmatprep.mubr.f32.mxu1 %v224_v52 }
 0x15c   :  { %329 = vmatmul.mubr.f32.gmra.mrb[2].mxu1 %v223_v53 }
 0x22b   :  { %v390_v54 = vpop.f32.mrb[0].mxu1 }
 0x22c   :  { %v391_v56 = vpop.f32.mrb[1].mxu1 }
 0x22d   :  { %v392_v57 = vadd.f32 %v391_v56, %v390_v54 }
 0x22f   :  { %v334_v58 = vadd.f32 %v392_v57, %v357_v55  ;;  %v393_v59 = vpop.f32.mrb[2].mxu1 }
 0x230   :  { %v394_v60 = vpop.f32.mrb[3].mxu1 }
 0x231   :  { %336 = vst [vmem:[#allocation11] sm:$0xff] %v334_v58  ;;  %v395_v61 = vadd.f32 %v394_v60, %v393_v59 }
 0x233   :  { %v335_v62 = vadd.f32 %v395_v61, %v357_v55 }
 0x235   :  { %337 = vst [vmem:[#allocation11 + $0x8] sm:$0xff] %v335_v62 }
 0x236   :  { %592 = shalt.err (!%p589_p2)
}
 0x237   :  { %s593_s8 = scalar_lea.hbm %s740_s5, 256 }
 0x238   :  { %p594_p3 = scmp.ne.s32.totalorder %s740_s5, %s593_s8  ;;  %p597_p4 = scmp.lt.u32.totalorder %s593_s8, %s740_s5 }
 0x23a   :  { %p599_p5 = pnand %p597_p4, %p594_p3 }
 0x23c   :  { %602 = shalt.err (!%p599_p5)
}
 0x23d   :  { %349 = dma.vmem_to_hbm [thread:$0]  %s344_s3, 256, %s740_s5, [#allocation4], %s616_s18, %s616_s18, %s617_s19  }
 0x23e   :  { %609 = dma.done.wait [#allocation4], 256  }
 0x23f   :  { %610 = vsyncadd [#allocation4], 4294967040 }
 0x240   :  { %353 = vsyncpa [#allocation3], 1 }
 0x241   :  { %354 = vsyncpa [#allocation6], 1 }
 0x242   :  { %355 = vsyncpa [#allocation9], 1 }
 0x243   :  { %356 = vsyncpa [#allocation4], 1 }

</bundles_post_ra>
